<compile_context>
chip_gen: v6e
topology: v6e:2x2x1
jax: 0.10.0
libtpu: 0.0.40
codegen_flags: <defaults>
</compile_context>

<pallas_src>
import numpy as np
import jax
import jax.numpy as jnp
from jax.experimental import pallas as pl
from jax.experimental.pallas import tpu as pltpu

SUBLANE_F32 = 8    # f32 sublane granularity (second-to-last dim)
SUBLANE_BF16 = 16  # bf16 packs two rows per sublane


def _round_up(x, m):
    return (x + m - 1) // m * m


def actor_kernel(x_ref, w1_ref, b1_ref, w2_ref, b2_ref, w3_ref, b3_ref,
                 high_ref, out_ref):
    # x / weights may be f32 or bf16 (MXU operands); accumulation and all
    # elementwise work are f32.
    x = x_ref[...]

    # layer1 + ReLU
    h1 = jnp.dot(x, w1_ref[...], preferred_element_type=jnp.float32) + b1_ref[...]
    h1 = jnp.maximum(h1, 0.0)

    # layer2 + ReLU (cast the activation to the weight dtype only for the MXU)
    h2 = jnp.dot(h1.astype(w2_ref.dtype), w2_ref[...],
                 preferred_element_type=jnp.float32) + b2_ref[...]
    h2 = jnp.maximum(h2, 0.0)

    # layer3 + Tanh
    a = jnp.dot(h2.astype(w3_ref.dtype), w3_ref[...],
                preferred_element_type=jnp.float32) + b3_ref[...]
    a = jnp.tanh(a)

    # scale by action_space.high AFTER tanh (exact PyTorch semantics)
    out_ref[...] = (a * high_ref[...]).astype(out_ref.dtype)


def actor_forward(x, params, action_high, *, tile_b=1024, mxu_dtype=jnp.float32):
    """x: [B, input_dim] float32. Returns [B, output_dim] float32."""
    w1, b1, w2, b2, w3, b3 = params
    B, in_dim = x.shape
    h1_dim = w1.shape[1]
    h2_dim = w2.shape[1]
    out_dim = w3.shape[1]

    sublane = SUBLANE_BF16 if mxu_dtype == jnp.bfloat16 else SUBLANE_F32

    # Batch tile: biggest sublane-aligned tile up to tile_b, but keep >= 2
    # grid steps when the batch allows it so the "parallel" axis can be
    # sharded across both v7x TensorCores.
    B_al = _round_up(B, sublane)
    tb = min(_round_up(tile_b, sublane), B_al)
    if B_al > sublane and B_al // tb < 2:
        tb = _round_up((B_al + 1) // 2, sublane)
    B_p = _round_up(B, tb)
    n_tiles = B_p // tb

    # Only the batch dim is padded (zero rows -> exact math, sliced off after).
    # x / out keep their natural narrow last dims: full-array last-dim blocks
    # are legal and keep HBM traffic at the real data size.
    x_p = jnp.pad(x, ((0, B_p - B), (0, 0))).astype(mxu_dtype)
    w1_c = w1.astype(mxu_dtype)
    w2_c = w2.astype(mxu_dtype)
    w3_c = w3.astype(mxu_dtype)
    # biases / action_high stay f32 (VPU/EUP work stays f32 on every chip).

    # Constant-index specs: DMA'd once, stay VMEM-resident across grid steps.
    resident = lambda shape: pl.BlockSpec(shape, lambda i: (0, 0))

    out_padded = pl.pallas_call(
        actor_kernel,
        out_shape=jax.ShapeDtypeStruct((B_p, out_dim), jnp.float32),
        grid=(n_tiles,),
        in_specs=[
            pl.BlockSpec((tb, in_dim), lambda i: (i, 0)),   # x tile per step
            resident((in_dim, h1_dim)), resident((1, h1_dim)),
            resident((h1_dim, h2_dim)), resident((1, h2_dim)),
            resident((h2_dim, out_dim)), resident((1, out_dim)),
            resident((1, out_dim)),                          # action_high
        ],
        out_specs=pl.BlockSpec((tb, out_dim), lambda i: (i, 0)),
        compiler_params=pltpu.CompilerParams(
            dimension_semantics=("parallel",)),
    )(x_p, w1_c, b1, w2_c, b2, w3_c, b3, action_high)

    return out_padded[:B, :]


def init_actor_params(key, input_dim, hidden1, hidden2, output_dim):
    """Mimics the PyTorch init: uniform(-f, f) with
       f = 1/sqrt(out_features) for layers 1,2 and f = 0.003 for layer3."""
    ks = jax.random.split(key, 6)

    def u(k, shape, factor):
        return jax.random.uniform(k, shape, jnp.float32, -factor, factor)

    f1 = 1.0 / np.sqrt(hidden1)
    f2 = 1.0 / np.sqrt(hidden2)
    f3 = 0.003
    # stored as [in, out] (transpose of PyTorch's [out, in]) for x @ W
    w1 = u(ks[0], (input_dim, hidden1), f1)
    b1 = u(ks[1], (1, hidden1), f1)
    w2 = u(ks[2], (hidden1, hidden2), f2)
    b2 = u(ks[3], (1, hidden2), f2)
    w3 = u(ks[4], (hidden2, output_dim), f3)
    b3 = u(ks[5], (1, output_dim), f3)
    return (w1, b1, w2, b2, w3, b3)


def actor_reference(x, params, action_high):
    w1, b1, w2, b2, w3, b3 = params
    h1 = jnp.maximum(x @ w1 + b1, 0.0)
    h2 = jnp.maximum(h1 @ w2 + b2, 0.0)
    a = jnp.tanh(h2 @ w3 + b3)
    return a * action_high


if __name__ == "__main__":
    # Small shapes consistent with the module: obs_dim=16, hidden=32/32, act_dim=8
    input_dim = 16
    hidden1 = 32
    hidden2 = 32
    output_dim = 8

    key = jax.random.PRNGKey(0)
    k_obs, k_params, k_high, k_big = jax.random.split(key, 4)

    params = init_actor_params(k_params, input_dim, hidden1, hidden2, output_dim)
    # action_space.high — deterministic positive bounds, shape [1, output_dim]
    action_high = jax.random.uniform(k_high, (1, output_dim), jnp.float32, 0.5, 2.0)

    # --- small batch (spec-consistent), f32 operand path ---
    x = jax.random.normal(k_obs, (2, input_dim), jnp.float32)
    out = jax.block_until_ready(actor_forward(x, params, action_high))
    ref = actor_reference(x, params, action_high)
    np.testing.assert_allclose(np.asarray(out), np.asarray(ref), rtol=1e-5, atol=1e-5)

    # --- larger, non-tile-multiple batch exercising the multi-step grid path ---
    x_big = jax.random.normal(k_big, (300, input_dim), jnp.float32)
    out_big = jax.block_until_ready(actor_forward(x_big, params, action_high))
    ref_big = actor_reference(x_big, params, action_high)
    np.testing.assert_allclose(np.asarray(out_big), np.asarray(ref_big),
                               rtol=1e-5, atol=1e-5)

    # --- bf16 MXU-operand fast path (v6e/v7x): f32 accumulation + f32 VPU ---
    out_bf16 = jax.block_until_ready(
        actor_forward(x_big, params, action_high, mxu_dtype=jnp.bfloat16))
    np.testing.assert_allclose(np.asarray(out_bf16), np.asarray(ref_big),
                               rtol=5e-2, atol=2e-2)

    print("KERNEL_OK")
</pallas_src>

<mosaic_0001>
module attributes {stable_mosaic.version = 11 : i64} {
  func.func @actor_kernel(%arg0: i32, %arg1: memref<8x16xf32, #tpu.memory_space<vmem>>, %arg2: memref<16x32xf32, #tpu.memory_space<vmem>>, %arg3: memref<1x32xf32, #tpu.memory_space<vmem>>, %arg4: memref<32x32xf32, #tpu.memory_space<vmem>>, %arg5: memref<1x32xf32, #tpu.memory_space<vmem>>, %arg6: memref<32x8xf32, #tpu.memory_space<vmem>>, %arg7: memref<1x8xf32, #tpu.memory_space<vmem>>, %arg8: memref<1x8xf32, #tpu.memory_space<vmem>>, %arg9: memref<8x8xf32, #tpu.memory_space<vmem>>) attributes {dimension_semantics = [#tpu.dimension_semantics<parallel>], iteration_bounds = array<i64: 1>, scalar_prefetch = 0 : i64, scratch_operands = 0 : i64, tpu.core_type = #tpu.core_type<tc>, window_params = [{transform_indices = @transform_0, window_bounds = array<i64: 8, 16>}, {pipeline_mode = #tpu.pipeline_mode<synchronous>, transform_indices = @transform_1, window_bounds = array<i64: 16, 32>}, {pipeline_mode = #tpu.pipeline_mode<synchronous>, transform_indices = @transform_2, window_bounds = array<i64: 1, 32>}, {pipeline_mode = #tpu.pipeline_mode<synchronous>, transform_indices = @transform_3, window_bounds = array<i64: 32, 32>}, {pipeline_mode = #tpu.pipeline_mode<synchronous>, transform_indices = @transform_4, window_bounds = array<i64: 1, 32>}, {pipeline_mode = #tpu.pipeline_mode<synchronous>, transform_indices = @transform_5, window_bounds = array<i64: 32, 8>}, {pipeline_mode = #tpu.pipeline_mode<synchronous>, transform_indices = @transform_6, window_bounds = array<i64: 1, 8>}, {pipeline_mode = #tpu.pipeline_mode<synchronous>, transform_indices = @transform_7, window_bounds = array<i64: 1, 8>}, {transform_indices = @transform_8, window_bounds = array<i64: 8, 8>}]} {
    %c0 = arith.constant 0 : index
    %c0_0 = arith.constant 0 : index
    %0 = vector.load %arg1[%c0, %c0_0] : memref<8x16xf32, #tpu.memory_space<vmem>>, vector<8x16xf32>
    %c0_1 = arith.constant 0 : index
    %c0_2 = arith.constant 0 : index
    %1 = vector.load %arg2[%c0_1, %c0_2] : memref<16x32xf32, #tpu.memory_space<vmem>>, vector<16x32xf32>
    %cst = arith.constant dense<0.000000e+00> : vector<8x32xf32>
    %2 = tpu.matmul %0, %1, %cst {dimension_numbers = #tpu.dot_dimension_numbers<[1], [0], [0], [1], [0, 0, 1, 1], [], []>} : vector<8x16xf32>, vector<16x32xf32>, vector<8x32xf32> -> vector<8x32xf32>
    %c0_3 = arith.constant 0 : index
    %c0_4 = arith.constant 0 : index
    %3 = vector.load %arg3[%c0_3, %c0_4] : memref<1x32xf32, #tpu.memory_space<vmem>>, vector<1x32xf32>
    %4 = vector.broadcast %3 : vector<1x32xf32> to vector<8x32xf32>
    %5 = arith.addf %2, %4 : vector<8x32xf32>
    %cst_5 = arith.constant 0.000000e+00 : f32
    %6 = vector.broadcast %cst_5 : f32 to vector<8x32xf32>
    %7 = arith.maximumf %5, %6 : vector<8x32xf32>
    %c0_6 = arith.constant 0 : index
    %c0_7 = arith.constant 0 : index
    %8 = vector.load %arg4[%c0_6, %c0_7] : memref<32x32xf32, #tpu.memory_space<vmem>>, vector<32x32xf32>
    %cst_8 = arith.constant dense<0.000000e+00> : vector<8x32xf32>
    %9 = tpu.matmul %7, %8, %cst_8 {dimension_numbers = #tpu.dot_dimension_numbers<[1], [0], [0], [1], [0, 0, 1, 1], [], []>} : vector<8x32xf32>, vector<32x32xf32>, vector<8x32xf32> -> vector<8x32xf32>
    %c0_9 = arith.constant 0 : index
    %c0_10 = arith.constant 0 : index
    %10 = vector.load %arg5[%c0_9, %c0_10] : memref<1x32xf32, #tpu.memory_space<vmem>>, vector<1x32xf32>
    %11 = vector.broadcast %10 : vector<1x32xf32> to vector<8x32xf32>
    %12 = arith.addf %9, %11 : vector<8x32xf32>
    %cst_11 = arith.constant 0.000000e+00 : f32
    %13 = vector.broadcast %cst_11 : f32 to vector<8x32xf32>
    %14 = arith.maximumf %12, %13 : vector<8x32xf32>
    %c0_12 = arith.constant 0 : index
    %c0_13 = arith.constant 0 : index
    %15 = vector.load %arg6[%c0_12, %c0_13] : memref<32x8xf32, #tpu.memory_space<vmem>>, vector<32x8xf32>
    %cst_14 = arith.constant dense<0.000000e+00> : vector<8x8xf32>
    %16 = tpu.matmul %14, %15, %cst_14 {dimension_numbers = #tpu.dot_dimension_numbers<[1], [0], [0], [1], [0, 0, 1, 1], [], []>} : vector<8x32xf32>, vector<32x8xf32>, vector<8x8xf32> -> vector<8x8xf32>
    %c0_15 = arith.constant 0 : index
    %c0_16 = arith.constant 0 : index
    %17 = vector.load %arg7[%c0_15, %c0_16] : memref<1x8xf32, #tpu.memory_space<vmem>>, vector<1x8xf32>
    %18 = vector.broadcast %17 : vector<1x8xf32> to vector<8x8xf32>
    %19 = arith.addf %16, %18 : vector<8x8xf32>
    %20 = math.tanh %19 : vector<8x8xf32>
    %c0_17 = arith.constant 0 : index
    %c0_18 = arith.constant 0 : index
    %21 = vector.load %arg8[%c0_17, %c0_18] : memref<1x8xf32, #tpu.memory_space<vmem>>, vector<1x8xf32>
    %22 = vector.broadcast %21 : vector<1x8xf32> to vector<8x8xf32>
    %23 = arith.mulf %20, %22 : vector<8x8xf32>
    %c0_19 = arith.constant 0 : index
    %c0_20 = arith.constant 0 : index
    %24 = vector.load %arg9[%c0_19, %c0_20] : memref<8x8xf32, #tpu.memory_space<vmem>>, vector<8x8xf32>
    tpu.vector_store %arg9[%c0_19, %c0_20], %23 {strides = array<i32>} : memref<8x8xf32, #tpu.memory_space<vmem>>, vector<8x8xf32>,
    return
  }
  func.func @transform_0(%arg0: i32) -> (i32, i32) {
    %c0_i32 = arith.constant 0 : i32
    %c0_i32_0 = arith.constant 0 : i32
    return %arg0, %c0_i32 : i32, i32
  }
  func.func @transform_1(%arg0: i32) -> (i32, i32) {
    %c0_i32 = arith.constant 0 : i32
    %c0_i32_0 = arith.constant 0 : i32
    %c0_i32_1 = arith.constant 0 : i32
    return %c0_i32, %c0_i32_0 : i32, i32
  }
  func.func @transform_2(%arg0: i32) -> (i32, i32) {
    %c0_i32 = arith.constant 0 : i32
    %c0_i32_0 = arith.constant 0 : i32
    %c0_i32_1 = arith.constant 0 : i32
    return %c0_i32, %c0_i32_0 : i32, i32
  }
  func.func @transform_3(%arg0: i32) -> (i32, i32) {
    %c0_i32 = arith.constant 0 : i32
    %c0_i32_0 = arith.constant 0 : i32
    %c0_i32_1 = arith.constant 0 : i32
    return %c0_i32, %c0_i32_0 : i32, i32
  }
  func.func @transform_4(%arg0: i32) -> (i32, i32) {
    %c0_i32 = arith.constant 0 : i32
    %c0_i32_0 = arith.constant 0 : i32
    %c0_i32_1 = arith.constant 0 : i32
    return %c0_i32, %c0_i32_0 : i32, i32
  }
  func.func @transform_5(%arg0: i32) -> (i32, i32) {
    %c0_i32 = arith.constant 0 : i32
    %c0_i32_0 = arith.constant 0 : i32
    %c0_i32_1 = arith.constant 0 : i32
    return %c0_i32, %c0_i32_0 : i32, i32
  }
  func.func @transform_6(%arg0: i32) -> (i32, i32) {
    %c0_i32 = arith.constant 0 : i32
    %c0_i32_0 = arith.constant 0 : i32
    %c0_i32_1 = arith.constant 0 : i32
    return %c0_i32, %c0_i32_0 : i32, i32
  }
  func.func @transform_7(%arg0: i32) -> (i32, i32) {
    %c0_i32 = arith.constant 0 : i32
    %c0_i32_0 = arith.constant 0 : i32
    %c0_i32_1 = arith.constant 0 : i32
    return %c0_i32, %c0_i32_0 : i32, i32
  }
  func.func @transform_8(%arg0: i32) -> (i32, i32) {
    %c0_i32 = arith.constant 0 : i32
    %c0_i32_0 = arith.constant 0 : i32
    return %arg0, %c0_i32 : i32, i32
  }
}

</mosaic_0001>

<bundles_post_ra>
// kernel: tpu_custom_call.1
= control target key start
LH: loop header
LB: loop body
LE: loop exit
PB: predicated region body
PF: predicated region fallthrough
CT: control target
= control target key end

     0   :  { %13 = vsyncpa [#allocation3], 0  ;;  %s564_s0 = inlined_call_operand.vmem [shape: f32[8,16], index: 0, kind: input, shape index: {}]   ;;  %s565_s1 = inlined_call_operand.hbm [shape: f32[16,32], index: 1, kind: input, shape index: {}]   ;;  %s566_s2 = inlined_call_operand.vmem [shape: f32[1,32], index: 2, kind: input, shape index: {}]   ;;  %s567_s3 = inlined_call_operand.vmem [shape: f32[32,32], index: 3, kind: input, shape index: {}]   ;;  %s568_s4 = inlined_call_operand.hbm [shape: f32[1,32], index: 4, kind: input, shape index: {}]   ;;  %s569_s5 = inlined_call_operand.vmem [shape: f32[32,8], index: 5, kind: input, shape index: {}]   ;;  %s570_s6 = inlined_call_operand.vmem [shape: f32[1,8], index: 6, kind: input, shape index: {}]   ;;  %s571_s7 = inlined_call_operand.vmem [shape: f32[1,8], index: 7, kind: input, shape index: {}]   ;;  %s572_s8 = inlined_call_operand.hbm [shape: f32[8,8], index: 8, kind: output, shape index: {}]  }
   0x1   :  { %14 = vsyncpa [#allocation6], 0 }
   0x2   :  { %15 = vsyncpa [#allocation4], 0  ;;  %s462_s27 = smov [#allocation2]  }
   0x3   :  { %s23_s28 = sshll.u32 %s462_s27, 4  ;;  %s24_s28 = int_to_ptr.vmem [resolvable:$true] %s23_s28 }
   0x4   :  { %s404_s29 = scalar_lea.vmem %s24_s28, 256  ;;  %p409_p1 = scmp.lt.s32.totalorder %s24_s28, %s24_s28 }
   0x5   :  { %p405_p0 = scmp.ne.s32.totalorder %s24_s28, %s404_s29  ;;  %p410_p2 = scmp.lt.s32.totalorder %s404_s29, %s404_s29 }
   0x7   :  { %p411_p3 = por %p410_p2, %p409_p1 }
   0x9   :  { %p412_p4 = pnand %p411_p3, %p405_p0 }
   0xb   :  { %415 = shalt.err (!%p412_p4)
}
   0xc   :  { %s463_s30 = smov 128   ;;  %s464_s9 = smov 8  }
   0xd   :  { %29 = dma.hbm_to_vmem [thread:$0]  %s565_s1, 256, %s24_s28, [#allocation3], %s463_s30, %s463_s30, %s464_s9  }
   0xe   :  { %s465_s12 = smov [#allocation5]  }
   0xf   :  { %s40_s13 = sshll.u32 %s465_s12, 4  ;;  %s41_s13 = int_to_ptr.vmem [resolvable:$true] %s40_s13 }
  0x10   :  { %s424_s14 = scalar_lea.vmem %s41_s13, 16  ;;  %s428_s15 = scalar_lea.vmem %s41_s13, 32 }
  0x11   :  { %p425_p5 = scmp.ne.s32.totalorder %s41_s13, %s424_s14  ;;  %p429_p6 = scmp.lt.s32.totalorder %s41_s13, %s41_s13 }
  0x12   :  { %p430_p7 = scmp.lt.s32.totalorder %s428_s15, %s424_s14 }
  0x14   :  { %p431_p8 = por %p430_p7, %p429_p6 }
  0x16   :  { %p432_p9 = pnand %p431_p8, %p425_p5 }
  0x18   :  { %435 = shalt.err (!%p432_p9)
}
  0x19   :  { %43 = dma.hbm_to_vmem [thread:$0]  %s568_s4, 16, %s41_s13, [#allocation6]  }
  0x1a   :  { %456 = dma.done.wait [#allocation3], 256  }
  0x1b   :  { %457 = vsyncadd [#allocation3], 4294967040 }
  0x1c   :  { %458 = dma.done.wait [#allocation6], 16  }
  0x1d   :  { %459 = vsyncadd [#allocation6], 4294967280  ;;  %v466_v0 = vmov 0.0   ;;  %vm467_vm0 = vmmov 0   ;;  %v58_v1 = vld [vmem:[#allocation2 + $0x8] sm:$0xff]  ;;  %v57_v2 = vld [vmem:[#allocation2] sm:$0xff] }
  0x1e   :  { %358 = vmatprep.subr.mxu0 %v466_v0  ;;  %362 = vmatprep.mubr.msk.f32.mxu0 %vm467_vm0, %v466_v0  ;;  %v56_v3 = vld [vmem:[%s564_s0] sm:$0xff]  ;;  %vm66_vm1 = vcmask 130048   ;;  %v144_v4 = vld [vmem:[%s567_s3 + $0x18] sm:$0xff]  ;;  %v143_v5 = vld [vmem:[%s567_s3 + $0x10] sm:$0xff]  ;;  %vm152_vm2 = vcmask 261120   ;;  %vm320_vm3 = vcmask 64512  }
  0x1f   :  { %365 = vmatprep.subr.mxu1 %v466_v0  ;;  %373 = vmatprep.mubr.msk.f32.mxu1 %vm467_vm0, %v466_v0  ;;  %v142_v6 = vld [vmem:[%s567_s3 + $0x8] sm:$0xff]  ;;  %v141_v7 = vld [vmem:[%s567_s3] sm:$0xff]  ;;  %v230_v8 = vld [vmem:[%s569_s5 + $0x18] sm:$0xff] }
  0x20   :  { %359 = vmatpush3.msra.mxu0 %v58_v1  ;;  %366 = vmatpush3.msra.mxu1 %v144_v4  ;;  %v338_v9 = vld [vmem:[%s566_s2] ss:$0 sm:$0xff]  ;;  %v229_v14 = vld [vmem:[%s569_s5 + $0x10] sm:$0xff]  ;;  %v228_v15 = vld [vmem:[%s569_s5 + $0x8] sm:$0xff] }
  0x21   :  { %360 = vmatprep.subr.mxu0 %v466_v0  ;;  %367 = vmatprep.subr.mxu1 %v466_v0  ;;  %v227_v16 = vld [vmem:[%s569_s5] sm:$0xff]  ;;  %v340_v17 = vld [vmem:[#allocation5] ss:$0 sm:$0xff]  ;;  %s468_s5 = smov [#allocation7]  }
  0x22   :  { %361 = vmatpush3.msra.mxu0 %v57_v2  ;;  %368 = vmatpush3.msra.mxu1 %v143_v5  ;;  %v342_v22 = vld [vmem:[%s570_s6] ss:$0 sm:$0xff]  ;;  %s328_s15 = sshll.u32 %s468_s5, 4  ;;  %s329_s15 = int_to_ptr.vmem [resolvable:$true] %s328_s15 }
  0x23   :  { %363 = vmatmul.mubr.msk.f32.vlgmr.msra.gmra.mxu0 %vm66_vm1, %v56_v3  ;;  %376 = vmatprep.subr.mxu0 %v466_v0  ;;  %v344_v26 = vld [vmem:[%s571_s7] ss:$0 sm:$0xff]  ;;  %s436_s16 = scalar_lea.vmem %s329_s15, 128  ;;  %p441_p11 = scmp.lt.s32.totalorder %s329_s15, %s329_s15 }
  0x24   :  { %384 = vmatprep.mubr.msk.f32.mxu0 %vm467_vm0, %v466_v0  ;;  %369 = vmatprep.subr.mxu1 %v466_v0  ;;  %p437_p10 = scmp.ne.s32.totalorder %s329_s15, %s436_s16  ;;  %p442_p12 = scmp.lt.s32.totalorder %s436_s16, %s436_s16 }
  0x25   :  { %370 = vmatpush3.msra.mxu1 %v142_v6  ;;  %377 = vmatpush3.msra.mxu0 %v230_v8 }
  0x26   :  { %371 = vmatprep.subr.mxu1 %v466_v0  ;;  %378 = vmatprep.subr.mxu0 %v466_v0  ;;  %p443_p13 = por %p442_p12, %p441_p11 }
  0x27   :  { %372 = vmatpush3.msra.mxu1 %v141_v7  ;;  %379 = vmatpush3.msra.mxu0 %v229_v14 }
  0x28   :  { %380 = vmatprep.subr.mxu0 %v466_v0  ;;  %p444_p0 = pnand %p443_p13, %p437_p10 }
  0x29   :  { %381 = vmatpush3.msra.mxu0 %v228_v15 }
  0x2a   :  { %382 = vmatprep.subr.mxu0 %v466_v0 }
  0x2b   :  { %383 = vmatpush3.msra.mxu0 %v227_v16 }
  0xe3   :  { %v136_v10 = vpop.f32.mrf.mxu0 }
  0xe4   :  { %v137_v11 = vadd.f32 %v338_v9, %v136_v10 }
  0xe5   :  { %v364_v12 = vpop.f32.mrf.mxu0 }
  0xe6   :  { %v140_v13 = vmax.f32 %v137_v11, 0.0 }
  0xe8   :  { %374 = vmatmul.mubr.msk.f32.vlgmr.msra.gmra.mxu1 %vm152_vm2, %v140_v13 }
 0x1a8   :  { %v222_v18 = vpop.f32.mrf.mxu1 }
 0x1a9   :  { %v223_v19 = vadd.f32 %v340_v17, %v222_v18 }
 0x1aa   :  { %v375_v20 = vpop.f32.mrf.mxu1 }
 0x1ab   :  { %v226_v21 = vmax.f32 %v223_v19, 0.0 }
 0x1ad   :  { %385 = vmatmul.mubr.msk.f32.vlgmr.msra.gmra.mxu0 %vm152_vm2, %v226_v21 }
 0x26d   :  { %v307_v23 = vpop.f32.mrf.mxu0 }
 0x26e   :  { %v308_v24 = vadd.f32 %v342_v22, %v307_v23 }
 0x26f   :  { %v386_v25 = vpop.f32.mrf.mxu0 }
 0x270   :  { %394 = vtanh.f32 %v308_v24 }
 0x27d   :  { %v395_v27 = vpop.eup %394 }
 0x27e   :  { %v319_v28 = vmul.f32 %v395_v27, %v344_v26 }
 0x280   :  { %321 = vst.msk [vmem:[#allocation7] sm:$0xff] %vm320_vm3, %v319_v28 }
 0x281   :  { %447 = shalt.err (!%p444_p0)
}
 0x282   :  { %331 = dma.vmem_to_hbm [thread:$0]  %s329_s15, 128, %s572_s8, [#allocation4]  }
 0x283   :  { %460 = dma.done.wait [#allocation4], 128  }
 0x284   :  { %461 = vsyncadd [#allocation4], 4294967168 }
 0x285   :  { %335 = vsyncpa [#allocation3], 1 }
 0x286   :  { %336 = vsyncpa [#allocation6], 1 }
 0x287   :  { %337 = vsyncpa [#allocation4], 1 }

</bundles_post_ra>
